<compile_context>
chip_gen: v6e
topology: v6e:2x2x1
jax: 0.10.0
libtpu: 0.0.40
codegen_flags: <defaults>
</compile_context>

<pallas_src>
import functools

import jax
import jax.numpy as jnp
from jax.experimental import pallas as pl
from jax.experimental.pallas import tpu as pltpu

EPS = 1e-6          # nn.PairwiseDistance default eps
N_POINTS = 30       # random.sample(..., 30) in the reference
N_REPEAT = 6        # hard-coded range(6) in the reference (list-aliasing tiling)


def _pcl_loss_kernel(idx_ref, src_ref, tgt_ref, out_ref, acc_ref, *, n_repeat):
    """Grid axis 0 = tiles of the flattened spatial (HW) axis (reduction).

    idx_ref: (1, N)        int32 flat keypoint indices (y*W + x), 30 unique points
    src_ref: (BC, HW_tile) f32 source feature map tile (batch*channel collapsed)
    tgt_ref: (BC, HW_tile) f32 target feature map tile
    out_ref: (1, 1)        f32 final loss
    acc_ref: (BC, N)       f32 VMEM scratch accumulating gathered (src - tgt)
    """
    h = pl.program_id(0)
    nh = pl.num_programs(0)
    bc, hw_t = src_ref.shape
    n = idx_ref.shape[1]

    @pl.when(h == 0)
    def _():
        acc_ref[...] = jnp.zeros_like(acc_ref)

    # One-hot gather matrix for this HW tile: onehot[p, k] = (p == idx[k] - tile_offset).
    # Keypoints outside this tile produce an all-zero column (contribute nothing).
    local_idx = idx_ref[...] - h * hw_t                                # (1, N)
    pos = jax.lax.broadcasted_iota(jnp.int32, (hw_t, n), 0)
    onehot = (pos == local_idx).astype(jnp.float32)                    # (hw_t, N)

    # gather(src) - gather(tgt) == gather(src - tgt): one MXU matmul per tile.
    acc_ref[...] += jnp.dot(src_ref[...] - tgt_ref[...], onehot,
                            preferred_element_type=jnp.float32)        # (BC, N)

    @pl.when(h == nh - 1)
    def _():
        # PairwiseDistance adds eps to the difference; dist^2 = sum_k diff^2 (sqrt
        # followed by squaring in the reference is a no-op and is dropped here).
        diff = acc_ref[...] + EPS                                      # (BC, N)
        sq = diff * diff
        per_row = jnp.sum(sq, axis=1, keepdims=True)                   # (BC, 1)
        total = jnp.sum(per_row, axis=0, keepdims=True)                # (1, 1)
        # 6x keypoint tiling -> sum over 180 kpts == n_repeat * sum over 30 unique kpts.
        out_ref[...] = total * jnp.float32(n_repeat / (2.0 * bc))


def _pick_hw_tile(hw, bc, budget_bytes=2 << 20, max_tile=8192):
    """Pick an HW tile: whole axis if small, else a 128-aligned divisor within budget."""
    cap = min(max_tile, max(128, (budget_bytes // (bc * 4)) // 128 * 128))
    if hw <= cap:
        return hw
    t = cap
    while t > 128 and hw % t != 0:
        t -= 128
    # Fall back to the full axis if no aligned divisor exists (legal, just larger DMA).
    return t if hw % t == 0 else hw


def _positive_loss_pallas(flat_idx, src2d, tgt2d, n_repeat):
    """mean(PairwiseDistance(D(src), D(tgt))**2)/2 via a single Pallas kernel."""
    bc, hw = src2d.shape
    n = flat_idx.shape[1]
    hw_tile = _pick_hw_tile(hw, bc)
    grid = (hw // hw_tile,)

    out = pl.pallas_call(
        functools.partial(_pcl_loss_kernel, n_repeat=n_repeat),
        out_shape=jax.ShapeDtypeStruct((1, 1), jnp.float32),
        grid=grid,
        in_specs=[
            pl.BlockSpec((1, n), lambda h: (0, 0)),
            pl.BlockSpec((bc, hw_tile), lambda h: (0, h)),
            pl.BlockSpec((bc, hw_tile), lambda h: (0, h)),
        ],
        out_specs=pl.BlockSpec((1, 1), lambda h: (0, 0)),
        scratch_shapes=[pltpu.VMEM((bc, n), jnp.float32)],
        compiler_params=pltpu.CompilerParams(
            dimension_semantics=("arbitrary",)),
    )(flat_idx, src2d, tgt2d)
    return out[0, 0]


def pixelwise_contrastive_loss(predicted, targetim, *, key,
                               margin=0.5, alpha=None, beta=None, n_neg=10):
    """JAX/Pallas equivalent of PixelwiseContrastiveLoss.forward.

    predicted, targetim: (B, C, H, W) float32, NCHW (B must be 6 to match the
    module's hard-coded keypoint batch of 6).  `key` replaces python random.sample.
    margin/alpha/beta/n_neg only affect the negative-loss path, never run by forward().
    """
    del margin, alpha, beta, n_neg  # unused in the executed forward path
    B, C, H, W = predicted.shape
    assert B == N_REPEAT, "reference module hard-codes a keypoint batch of 6"
    assert H > N_POINTS and W > N_POINTS

    kx, ky = jax.random.split(key)
    # random.sample(range(1, W), 30) / range(1, H): distinct ints, deterministic here.
    point_x = jax.random.choice(kx, jnp.arange(1, W), (N_POINTS,), replace=False)
    point_y = jax.random.choice(ky, jnp.arange(1, H), (N_POINTS,), replace=False)

    # Only the 30 unique keypoints are gathered; the 6x list-aliasing tiling of the
    # reference is folded into a scalar factor of N_REPEAT inside the kernel.
    flat_idx = (point_y * W + point_x).astype(jnp.int32).reshape(1, N_POINTS)

    # Collapse batch and channel so the whole gather is one matmul per HW tile.
    src2d = predicted.reshape(B * C, H * W).astype(jnp.float32)
    tgt2d = targetim.reshape(B * C, H * W).astype(jnp.float32)

    # loss3 (src vs src): every element of D(src)-D(src)+eps equals eps, so
    # loss3 = n_kpts_total * eps^2 / 2 — a closed-form constant; no kernel needed.
    loss3 = jnp.float32(N_POINTS * N_REPEAT * EPS * EPS / 2.0)

    loss4 = _positive_loss_pallas(flat_idx, src2d, tgt2d, N_REPEAT)
    return jnp.maximum(loss3, loss4)


def _reference_loss(predicted, targetim, point_x, point_y):
    """Pure-JAX reference (full 180-keypoint formulation) for correctness checking."""
    xs = jnp.tile(point_x, N_REPEAT)
    ys = jnp.tile(point_y, N_REPEAT)

    def one(src, tgt):
        d_s = src[:, :, ys, xs]                           # (B, C, 180)
        d_t = tgt[:, :, ys, xs]
        diff = d_s - d_t + EPS
        dist = jnp.sqrt(jnp.sum(diff * diff, axis=-1))    # (B, C)
        return jnp.mean(dist * dist) / 2.0

    return jnp.maximum(one(predicted, predicted), one(predicted, targetim))


if __name__ == "__main__":
    key = jax.random.PRNGKey(0)
    k1, k2, k3 = jax.random.split(key, 3)

    B, C, H, W = 6, 4, 32, 32   # B=6 matches the module's hard-coded keypoint batches
    predicted = jax.random.normal(k1, (B, C, H, W), dtype=jnp.float32)
    targetim = jax.random.normal(k2, (B, C, H, W), dtype=jnp.float32)

    loss = pixelwise_contrastive_loss(predicted, targetim, key=k3)
    loss = jax.block_until_ready(loss)

    # Cross-check against a pure-JAX reference using the same keypoints.
    kx, ky = jax.random.split(k3)
    point_x = jax.random.choice(kx, jnp.arange(1, W), (N_POINTS,), replace=False)
    point_y = jax.random.choice(ky, jnp.arange(1, H), (N_POINTS,), replace=False)
    ref = _reference_loss(predicted, targetim, point_x, point_y)
    assert jnp.allclose(loss, ref, rtol=1e-5, atol=1e-6), (loss, ref)

    print("KERNEL_OK")
</pallas_src>

<mosaic_0001>
module attributes {stable_mosaic.version = 11 : i64} {
  func.func @_pcl_loss_kernel(%arg0: i32, %arg1: memref<1x30xi32, #tpu.memory_space<vmem>>, %arg2: memref<24x1024xf32, #tpu.memory_space<vmem>>, %arg3: memref<24x1024xf32, #tpu.memory_space<vmem>>, %arg4: memref<1x1xf32, #tpu.memory_space<vmem>>, %arg5: memref<24x30xf32, #tpu.memory_space<vmem>>) attributes {dimension_semantics = [#tpu.dimension_semantics<arbitrary>], iteration_bounds = array<i64: 1>, scalar_prefetch = 0 : i64, scratch_operands = 1 : i64, tpu.core_type = #tpu.core_type<tc>, window_params = [{pipeline_mode = #tpu.pipeline_mode<synchronous>, transform_indices = @transform_0, window_bounds = array<i64: 1, 30>}, {transform_indices = @transform_1, window_bounds = array<i64: 24, 1024>}, {transform_indices = @transform_2, window_bounds = array<i64: 24, 1024>}, {pipeline_mode = #tpu.pipeline_mode<synchronous>, transform_indices = @transform_3, window_bounds = array<i64: 1, 1>}]} {
    %c0_i32 = arith.constant 0 : i32
    %0 = arith.cmpi eq, %arg0, %c0_i32 : i32
    %1 = arith.extui %0 : i1 to i32
    %c0_i32_0 = arith.constant 0 : i32
    %2 = arith.cmpi ne, %1, %c0_i32_0 : i32
    scf.if %2 {
      %cst_12 = arith.constant 0.000000e+00 : f32
      %22 = vector.broadcast %cst_12 : f32 to vector<24x30xf32>
      %c0_13 = arith.constant 0 : index
      %c0_14 = arith.constant 0 : index
      %23 = vector.load %arg5[%c0_13, %c0_14] : memref<24x30xf32, #tpu.memory_space<vmem>>, vector<24x30xf32>
      tpu.vector_store %arg5[%c0_13, %c0_14], %22 {strides = array<i32>} : memref<24x30xf32, #tpu.memory_space<vmem>>, vector<24x30xf32>,
    } else {
    }
    %c0 = arith.constant 0 : index
    %c0_1 = arith.constant 0 : index
    %3 = vector.load %arg1[%c0, %c0_1] : memref<1x30xi32, #tpu.memory_space<vmem>>, vector<1x30xi32>
    %c1024_i32 = arith.constant 1024 : i32
    %4 = arith.muli %arg0, %c1024_i32 : i32
    %5 = vector.broadcast %4 : i32 to vector<1x30xi32>
    %6 = arith.subi %3, %5 : vector<1x30xi32>
    %7 = tpu.iota {dimensions = array<i32: 0>} : vector<1024x30xi32>
    %8 = vector.broadcast %6 : vector<1x30xi32> to vector<1024x30xi32>
    %9 = arith.cmpi eq, %7, %8 : vector<1024x30xi32>
    %10 = arith.extui %9 : vector<1024x30xi1> to vector<1024x30xi32>
    %11 = arith.sitofp %10 : vector<1024x30xi32> to vector<1024x30xf32>
    %c0_2 = arith.constant 0 : index
    %c0_3 = arith.constant 0 : index
    %12 = vector.load %arg5[%c0_2, %c0_3] : memref<24x30xf32, #tpu.memory_space<vmem>>, vector<24x30xf32>
    %c0_4 = arith.constant 0 : index
    %c0_5 = arith.constant 0 : index
    %13 = vector.load %arg2[%c0_4, %c0_5] : memref<24x1024xf32, #tpu.memory_space<vmem>>, vector<24x1024xf32>
    %c0_6 = arith.constant 0 : index
    %c0_7 = arith.constant 0 : index
    %14 = vector.load %arg3[%c0_6, %c0_7] : memref<24x1024xf32, #tpu.memory_space<vmem>>, vector<24x1024xf32>
    %15 = arith.subf %13, %14 : vector<24x1024xf32>
    %cst = arith.constant dense<0.000000e+00> : vector<24x30xf32>
    %16 = tpu.matmul %15, %11, %cst {dimension_numbers = #tpu.dot_dimension_numbers<[1], [0], [0], [1], [0, 0, 1, 1], [], []>} : vector<24x1024xf32>, vector<1024x30xf32>, vector<24x30xf32> -> vector<24x30xf32>
    %17 = arith.addf %12, %16 : vector<24x30xf32>
    %c0_8 = arith.constant 0 : index
    %c0_9 = arith.constant 0 : index
    %18 = vector.load %arg5[%c0_8, %c0_9] : memref<24x30xf32, #tpu.memory_space<vmem>>, vector<24x30xf32>
    tpu.vector_store %arg5[%c0_8, %c0_9], %17 {strides = array<i32>} : memref<24x30xf32, #tpu.memory_space<vmem>>, vector<24x30xf32>,
    %c0_i32_10 = arith.constant 0 : i32
    %19 = arith.cmpi eq, %arg0, %c0_i32_10 : i32
    %20 = arith.extui %19 : i1 to i32
    %c0_i32_11 = arith.constant 0 : i32
    %21 = arith.cmpi ne, %20, %c0_i32_11 : i32
    scf.if %21 {
      %c0_12 = arith.constant 0 : index
      %c0_13 = arith.constant 0 : index
      %22 = vector.load %arg5[%c0_12, %c0_13] : memref<24x30xf32, #tpu.memory_space<vmem>>, vector<24x30xf32>
      %cst_14 = arith.constant 9.99999997E-7 : f32
      %23 = vector.broadcast %cst_14 : f32 to vector<24x30xf32>
      %24 = arith.addf %22, %23 : vector<24x30xf32>
      %25 = arith.mulf %24, %24 : vector<24x30xf32>
      %cst_15 = arith.constant dense<0.000000e+00> : vector<24xf32>
      %26 = vector.multi_reduction <add>, %25, %cst_15 [1] : vector<24x30xf32> to vector<24xf32>
      %27 = vector.shape_cast %26 : vector<24xf32> to vector<24x1xf32>
      %cst_16 = arith.constant dense<0.000000e+00> : vector<1xf32>
      %28 = vector.multi_reduction <add>, %27, %cst_16 [0] : vector<24x1xf32> to vector<1xf32>
      %29 = vector.shape_cast %28 : vector<1xf32> to vector<1x1xf32>
      %cst_17 = arith.constant 1.250000e-01 : f32
      %30 = vector.broadcast %cst_17 : f32 to vector<1x1xf32>
      %31 = arith.mulf %29, %30 : vector<1x1xf32>
      %c0_18 = arith.constant 0 : index
      %c0_19 = arith.constant 0 : index
      %32 = vector.load %arg4[%c0_18, %c0_19] : memref<1x1xf32, #tpu.memory_space<vmem>>, vector<1x1xf32>
      tpu.vector_store %arg4[%c0_18, %c0_19], %31 {strides = array<i32>} : memref<1x1xf32, #tpu.memory_space<vmem>>, vector<1x1xf32>,
    } else {
    }
    return
  }
  func.func @transform_0(%arg0: i32) -> (i32, i32) {
    %c0_i32 = arith.constant 0 : i32
    %c0_i32_0 = arith.constant 0 : i32
    %c0_i32_1 = arith.constant 0 : i32
    return %c0_i32, %c0_i32_0 : i32, i32
  }
  func.func @transform_1(%arg0: i32) -> (i32, i32) {
    %c0_i32 = arith.constant 0 : i32
    %c0_i32_0 = arith.constant 0 : i32
    return %c0_i32, %arg0 : i32, i32
  }
  func.func @transform_2(%arg0: i32) -> (i32, i32) {
    %c0_i32 = arith.constant 0 : i32
    %c0_i32_0 = arith.constant 0 : i32
    return %c0_i32, %arg0 : i32, i32
  }
  func.func @transform_3(%arg0: i32) -> (i32, i32) {
    %c0_i32 = arith.constant 0 : i32
    %c0_i32_0 = arith.constant 0 : i32
    %c0_i32_1 = arith.constant 0 : i32
    return %c0_i32, %c0_i32_0 : i32, i32
  }
}

</mosaic_0001>

<bundles_post_ra>
// kernel: tpu_custom_call.1
= control target key start
LH: loop header
LB: loop body
LE: loop exit
PB: predicated region body
PF: predicated region fallthrough
CT: control target
= control target key end

     0   :  { %8 = vsyncpa [#allocation4], 0  ;;  %s2214_s0 = inlined_call_operand.hbm [shape: s32[1,30], index: 0, kind: input, shape index: {}]   ;;  %s2215_s1 = inlined_call_operand.hbm [shape: f32[24,1024], index: 1, kind: input, shape index: {}]   ;;  %s2216_s2 = inlined_call_operand.hbm [shape: f32[24,1024], index: 2, kind: input, shape index: {}]   ;;  %s2217_s3 = inlined_call_operand.hbm [shape: f32[1,1], index: 3, kind: output, shape index: {}]  }
   0x1   :  { %9 = vsyncpa [#allocation7], 0 }
   0x2   :  { %10 = vsyncpa [#allocation5], 0  ;;  %s1548_s12 = smov [#allocation6]  }
   0x3   :  { %s26_s13 = sshll.u32 %s1548_s12, 4  ;;  %s27_s13 = int_to_ptr.vmem [resolvable:$true] %s26_s13 }
   0x4   :  { %s1470_s14 = scalar_lea.vmem %s27_s13, 3072  ;;  %p1475_p1 = scmp.lt.s32.totalorder %s27_s13, %s27_s13 }
   0x5   :  { %p1471_p0 = scmp.ne.s32.totalorder %s27_s13, %s1470_s14  ;;  %p1476_p2 = scmp.lt.s32.totalorder %s1470_s14, %s1470_s14 }
   0x7   :  { %p1477_p3 = por %p1476_p2, %p1475_p1 }
   0x9   :  { %p1478_p4 = pnand %p1477_p3, %p1471_p0 }
   0xb   :  { %1481 = shalt.err (!%p1478_p4)
}
   0xc   :  { %s1549_s15 = smov 1024   ;;  %s1550_s16 = smov 64  }
   0xd   :  { %32 = dma.hbm_to_vmem [thread:$0]  %s2215_s1, 3072, %s27_s13, [#allocation7], %s1549_s15, %s1549_s15, %s1550_s16  }
   0xe   :  { %s1551_s19 = smov [#allocation3]   ;;  %s1552_s21 = smov [#allocation8]  }
   0xf   :  { %s17_s20 = sshll.u32 %s1551_s19, 4  ;;  %s38_s22 = sshll.u32 %s1552_s21, 4  ;;  %s18_s20 = int_to_ptr.vmem [resolvable:$true] %s17_s20  ;;  %s39_s22 = int_to_ptr.vmem [resolvable:$true] %s38_s22 }
  0x10   :  { %s1490_s23 = scalar_lea.vmem %s18_s20, 16  ;;  %s1494_s24 = scalar_lea.vmem %s18_s20, 32 }
  0x11   :  { %p1491_p5 = scmp.ne.s32.totalorder %s18_s20, %s1490_s23  ;;  %p1495_p6 = scmp.lt.s32.totalorder %s18_s20, %s18_s20 }
  0x12   :  { %p1496_p7 = scmp.lt.s32.totalorder %s1494_s24, %s1490_s23 }
  0x14   :  { %p1497_p8 = por %p1496_p7, %p1495_p6 }
  0x16   :  { %p1498_p9 = pnand %p1497_p8, %p1491_p5 }
  0x18   :  { %1501 = shalt.err (!%p1498_p9)
}
  0x19   :  { %20 = dma.hbm_to_vmem [thread:$0]  %s2214_s0, 16, %s18_s20, [#allocation4]  }
  0x1a   :  { %s1510_s27 = scalar_lea.vmem %s39_s22, 3072  ;;  %p1515_p11 = scmp.lt.s32.totalorder %s39_s22, %s39_s22 }
  0x1b   :  { %p1511_p10 = scmp.ne.s32.totalorder %s39_s22, %s1510_s27  ;;  %p1516_p12 = scmp.lt.s32.totalorder %s1510_s27, %s1510_s27 }
  0x1d   :  { %p1517_p13 = por %p1516_p12, %p1515_p11 }
  0x1f   :  { %p1518_p0 = pnand %p1517_p13, %p1511_p10 }
  0x21   :  { %1521 = shalt.err (!%p1518_p0)
}
  0x22   :  { %44 = dma.hbm_to_vmem [thread:$0]  %s2216_s2, 3072, %s39_s22, [#allocation7], %s1549_s15, %s1549_s15, %s1550_s16  }
  0x23   :  { %1542 = dma.done.wait [#allocation4], 16  }
  0x24   :  { %1543 = vsyncadd [#allocation4], 4294967280 }
  0x25   :  { %1544 = dma.done.wait [#allocation7], 6144  }
  0x26   :  { %1545 = vsyncadd [#allocation7], 4294961152  ;;  %v66_v0 = vlaneseq  ;;  %v1599_v14 = vld [vmem:[#allocation3] ss:$0 sm:$0xff]  ;;  %v1553_v19 = vmov 1.0   ;;  %s1555_s0 = smov [#allocation9]  }
  0x27   :  { %s1023_s2 = sshll.u32 %s1555_s0, 4  ;;  %s1024_s2 = int_to_ptr.vmem [resolvable:$true] %s1023_s2 }
  0x28   :  { %v1585_v1 = vshrl.u32 %v66_v0, 7  ;;  %v587_v0 = vld [vmem:[#allocation6 + $0x8] sm:$0xff]  ;;  %s1522_s29 = scalar_lea.vmem %s1024_s2, 16  ;;  %s1526_s30 = scalar_lea.vmem %s1024_s2, 32 }
  0x29   :  { %p1523_p1 = scmp.ne.s32.totalorder %s1024_s2, %s1522_s29  ;;  %p1527_p2 = scmp.lt.s32.totalorder %s1024_s2, %s1024_s2 }
  0x2a   :  { %v98_v2 = vadd.s32 248, %v1585_v1  ;;  %v130_v3 = vadd.s32 504, %v1585_v1  ;;  %v82_v4 = vadd.s32 120, %v1585_v1  ;;  %v114_v5 = vadd.s32 376, %v1585_v1  ;;  %p1528_p3 = scmp.lt.s32.totalorder %s1526_s30, %s1522_s29 }
  0x2b   :  { %v97_v6 = vadd.s32 240, %v1585_v1  ;;  %v129_v7 = vadd.s32 496, %v1585_v1  ;;  %v81_v8 = vadd.s32 112, %v1585_v1  ;;  %v113_v9 = vadd.s32 368, %v1585_v1 }
  0x2c   :  { %v96_v10 = vadd.s32 232, %v1585_v1  ;;  %v128_v11 = vadd.s32 488, %v1585_v1  ;;  %v80_v12 = vadd.s32 104, %v1585_v1  ;;  %v112_v13 = vadd.s32 360, %v1585_v1  ;;  %p1529_p4 = por %p1528_p3, %p1527_p2 }
  0x2d   :  { %v95_v15 = vadd.s32 224, %v1585_v1  ;;  %v127_v16 = vadd.s32 480, %v1585_v1  ;;  %v79_v17 = vadd.s32 96, %v1585_v1  ;;  %v111_v18 = vadd.s32 352, %v1585_v1 }
  0x2e   :  { %vm230_vm0 = vcmp.eq.s32.totalorder %v98_v2, %v1599_v14  ;;  %vm262_vm1 = vcmp.eq.s32.totalorder %v130_v3, %v1599_v14  ;;  %vm214_vm2 = vcmp.eq.s32.totalorder %v82_v4, %v1599_v14  ;;  %vm246_vm3 = vcmp.eq.s32.totalorder %v114_v5, %v1599_v14  ;;  %v611_v2 = vld [vmem:[#allocation8 + $0x8] sm:$0xff]  ;;  %v589_v4 = vld [vmem:[#allocation6 + $0x18] sm:$0xff]  ;;  %p1530_p5 = pnand %p1529_p4, %p1523_p1 }
  0x2f   :  { %1290 = vmatprep.subr.msk.mxu0 %vm230_vm0, %v1553_v19  ;;  %1331 = vmatprep.subr.msk.mxu1 %vm262_vm1, %v1553_v19  ;;  %vm229_vm4 = vcmp.eq.s32.totalorder %v97_v6, %v1599_v14  ;;  %vm261_vm5 = vcmp.eq.s32.totalorder %v129_v7, %v1599_v14  ;;  %vm213_vm6 = vcmp.eq.s32.totalorder %v81_v8, %v1599_v14  ;;  %v94_v20 = vadd.s32 216, %v1585_v1  ;;  %v613_v5 = vld [vmem:[#allocation8 + $0x18] sm:$0xff]  ;;  %v586_v7 = vld [vmem:[#allocation6] sm:$0xff] }
  0x30   :  { %1291 = vmatpush3.msk.msra.mxu0 %vm214_vm2, %v1553_v19  ;;  %1332 = vmatpush3.msk.msra.mxu1 %vm246_vm3, %v1553_v19  ;;  %vm245_vm7 = vcmp.eq.s32.totalorder %v113_v9, %v1599_v14  ;;  %vm228_vm8 = vcmp.eq.s32.totalorder %v96_v10, %v1599_v14  ;;  %vm260_vm9 = vcmp.eq.s32.totalorder %v128_v11, %v1599_v14  ;;  %v126_v21 = vadd.s32 472, %v1585_v1  ;;  %v610_v8 = vld [vmem:[#allocation8] sm:$0xff]  ;;  %v588_v11 = vld [vmem:[#allocation6 + $0x10] sm:$0xff] }
  0x31   :  { %1292 = vmatprep.subr.msk.mxu0 %vm229_vm4, %v1553_v19  ;;  %1333 = vmatprep.subr.msk.mxu1 %vm261_vm5, %v1553_v19  ;;  %vm212_vm10 = vcmp.eq.s32.totalorder %v80_v12, %v1599_v14  ;;  %vm244_vm11 = vcmp.eq.s32.totalorder %v112_v13, %v1599_v14  ;;  %v78_v22 = vadd.s32 88, %v1585_v1  ;;  %vm227_vm12 = vcmp.eq.s32.totalorder %v95_v15, %v1599_v14  ;;  %v612_v12 = vld [vmem:[#allocation8 + $0x10] sm:$0xff] }
  0x32   :  { %1293 = vmatpush3.msk.msra.mxu0 %vm213_vm6, %v1553_v19  ;;  %1334 = vmatpush3.msk.msra.mxu1 %vm245_vm7, %v1553_v19  ;;  %vm259_vm13 = vcmp.eq.s32.totalorder %v127_v16, %v1599_v14  ;;  %vm211_vm14 = vcmp.eq.s32.totalorder %v79_v17, %v1599_v14  ;;  %v110_v23 = vadd.s32 344, %v1585_v1  ;;  %vm243_vm15 = vcmp.eq.s32.totalorder %v111_v18, %v1599_v14 }
  0x33   :  { %1294 = vmatprep.subr.msk.mxu0 %vm228_vm8, %v1553_v19  ;;  %1335 = vmatprep.subr.msk.mxu1 %vm260_vm9, %v1553_v19  ;;  %vm226_vm0 = vcmp.eq.s32.totalorder %v94_v20, %v1599_v14  ;;  %vm258_vm1 = vcmp.eq.s32.totalorder %v126_v21, %v1599_v14  ;;  %v93_v24 = vadd.s32 208, %v1585_v1  ;;  %vm210_vm2 = vcmp.eq.s32.totalorder %v78_v22, %v1599_v14 }
  0x34   :  { %1295 = vmatpush3.msk.msra.mxu0 %vm212_vm10, %v1553_v19  ;;  %1336 = vmatpush3.msk.msra.mxu1 %vm244_vm11, %v1553_v19  ;;  %v125_v25 = vadd.s32 464, %v1585_v1  ;;  %v77_v26 = vadd.s32 80, %v1585_v1  ;;  %v109_v27 = vadd.s32 336, %v1585_v1  ;;  %vm242_vm3 = vcmp.eq.s32.totalorder %v110_v23, %v1599_v14 }
  0x35   :  { %1296 = vmatprep.subr.msk.mxu0 %vm227_vm12, %v1553_v19  ;;  %1337 = vmatprep.subr.msk.mxu1 %vm259_vm13, %v1553_v19  ;;  %v92_v28 = vadd.s32 200, %v1585_v1  ;;  %v124_v29 = vadd.s32 456, %v1585_v1  ;;  %v76_v30 = vadd.s32 72, %v1585_v1  ;;  %vm225_vm4 = vcmp.eq.s32.totalorder %v93_v24, %v1599_v14 }
  0x36   :  { %1297 = vmatpush3.msk.msra.mxu0 %vm211_vm14, %v1553_v19  ;;  %1338 = vmatpush3.msk.msra.mxu1 %vm243_vm15, %v1553_v19  ;;  %vm257_vm5 = vcmp.eq.s32.totalorder %v125_v25, %v1599_v14  ;;  %vm209_vm6 = vcmp.eq.s32.totalorder %v77_v26, %v1599_v14  ;;  %v108_v31 = vadd.s32 328, %v1585_v1  ;;  %vm241_vm7 = vcmp.eq.s32.totalorder %v109_v27, %v1599_v14 }
  0x37   :  { %1298 = vmatprep.subr.msk.mxu0 %vm226_vm0, %v1553_v19  ;;  %1339 = vmatprep.subr.msk.mxu1 %vm258_vm1, %v1553_v19  ;;  %vm224_vm8 = vcmp.eq.s32.totalorder %v92_v28, %v1599_v14  ;;  %vm256_vm9 = vcmp.eq.s32.totalorder %v124_v29, %v1599_v14  ;;  %v91_v32 = vadd.s32 192, %v1585_v1  ;;  %vm208_vm10 = vcmp.eq.s32.totalorder %v76_v30, %v1599_v14 }
  0x38   :  { %1299 = vmatpush3.msk.msra.mxu0 %vm210_vm2, %v1553_v19  ;;  %1340 = vmatpush3.msk.msra.mxu1 %vm242_vm3, %v1553_v19  ;;  %v123_v33 = vadd.s32 448, %v1585_v1  ;;  %v75_v34 = vadd.s32 64, %v1585_v1  ;;  %v107_v35 = vadd.s32 320, %v1585_v1  ;;  %vm240_vm11 = vcmp.eq.s32.totalorder %v108_v31, %v1599_v14 }
  0x39   :  { %1300 = vmatprep.subr.msk.mxu0 %vm225_vm4, %v1553_v19  ;;  %1341 = vmatprep.subr.msk.mxu1 %vm257_vm5, %v1553_v19  ;;  %v90_v36 = vadd.s32 184, %v1585_v1  ;;  %v122_v37 = vadd.s32 440, %v1585_v1  ;;  %v74_v38 = vadd.s32 56, %v1585_v1  ;;  %vm223_vm12 = vcmp.eq.s32.totalorder %v91_v32, %v1599_v14 }
  0x3a   :  { %1301 = vmatpush3.msk.msra.mxu0 %vm209_vm6, %v1553_v19  ;;  %1342 = vmatpush3.msk.msra.mxu1 %vm241_vm7, %v1553_v19  ;;  %vm255_vm13 = vcmp.eq.s32.totalorder %v123_v33, %v1599_v14  ;;  %vm207_vm14 = vcmp.eq.s32.totalorder %v75_v34, %v1599_v14  ;;  %v106_v39 = vadd.s32 312, %v1585_v1  ;;  %vm239_vm15 = vcmp.eq.s32.totalorder %v107_v35, %v1599_v14 }
  0x3b   :  { %1302 = vmatprep.subr.msk.mxu0 %vm224_vm8, %v1553_v19  ;;  %1343 = vmatprep.subr.msk.mxu1 %vm256_vm9, %v1553_v19  ;;  %vm222_vm0 = vcmp.eq.s32.totalorder %v90_v36, %v1599_v14  ;;  %vm254_vm1 = vcmp.eq.s32.totalorder %v122_v37, %v1599_v14  ;;  %v89_v40 = vadd.s32 176, %v1585_v1  ;;  %vm206_vm2 = vcmp.eq.s32.totalorder %v74_v38, %v1599_v14 }
  0x3c   :  { %1303 = vmatpush3.msk.msra.mxu0 %vm208_vm10, %v1553_v19  ;;  %1344 = vmatpush3.msk.msra.mxu1 %vm240_vm11, %v1553_v19  ;;  %v121_v41 = vadd.s32 432, %v1585_v1  ;;  %v73_v42 = vadd.s32 48, %v1585_v1  ;;  %v105_v43 = vadd.s32 304, %v1585_v1  ;;  %vm238_vm3 = vcmp.eq.s32.totalorder %v106_v39, %v1599_v14 }
  0x3d   :  { %1304 = vmatprep.subr.msk.mxu0 %vm223_vm12, %v1553_v19  ;;  %1345 = vmatprep.subr.msk.mxu1 %vm255_vm13, %v1553_v19  ;;  %v88_v44 = vadd.s32 168, %v1585_v1  ;;  %v120_v45 = vadd.s32 424, %v1585_v1  ;;  %v72_v46 = vadd.s32 40, %v1585_v1  ;;  %vm221_vm4 = vcmp.eq.s32.totalorder %v89_v40, %v1599_v14 }
  0x3e   :  { %1305 = vmatpush3.msk.msra.mxu0 %vm207_vm14, %v1553_v19  ;;  %1346 = vmatpush3.msk.msra.mxu1 %vm239_vm15, %v1553_v19  ;;  %vm253_vm5 = vcmp.eq.s32.totalorder %v121_v41, %v1599_v14  ;;  %vm205_vm6 = vcmp.eq.s32.totalorder %v73_v42, %v1599_v14  ;;  %v104_v47 = vadd.s32 296, %v1585_v1  ;;  %vm237_vm7 = vcmp.eq.s32.totalorder %v105_v43, %v1599_v14 }
  0x3f   :  { %1306 = vmatprep.subr.msk.mxu0 %vm222_vm0, %v1553_v19  ;;  %1347 = vmatprep.subr.msk.mxu1 %vm254_vm1, %v1553_v19  ;;  %vm220_vm8 = vcmp.eq.s32.totalorder %v88_v44, %v1599_v14  ;;  %vm252_vm9 = vcmp.eq.s32.totalorder %v120_v45, %v1599_v14  ;;  %v87_v48 = vadd.s32 160, %v1585_v1  ;;  %vm204_vm10 = vcmp.eq.s32.totalorder %v72_v46, %v1599_v14 }
  0x40   :  { %1307 = vmatpush3.msk.msra.mxu0 %vm206_vm2, %v1553_v19  ;;  %1348 = vmatpush3.msk.msra.mxu1 %vm238_vm3, %v1553_v19  ;;  %v119_v49 = vadd.s32 416, %v1585_v1  ;;  %v71_v50 = vadd.s32 32, %v1585_v1  ;;  %v103_v51 = vadd.s32 288, %v1585_v1  ;;  %vm236_vm11 = vcmp.eq.s32.totalorder %v104_v47, %v1599_v14 }
  0x41   :  { %1308 = vmatprep.subr.msk.mxu0 %vm221_vm4, %v1553_v19  ;;  %1349 = vmatprep.subr.msk.mxu1 %vm253_vm5, %v1553_v19  ;;  %v86_v52 = vadd.s32 152, %v1585_v1  ;;  %v118_v53 = vadd.s32 408, %v1585_v1  ;;  %v70_v54 = vadd.s32 24, %v1585_v1  ;;  %vm219_vm12 = vcmp.eq.s32.totalorder %v87_v48, %v1599_v14 }
  0x42   :  { %1309 = vmatpush3.msk.msra.mxu0 %vm205_vm6, %v1553_v19  ;;  %1350 = vmatpush3.msk.msra.mxu1 %vm237_vm7, %v1553_v19  ;;  %vm251_vm13 = vcmp.eq.s32.totalorder %v119_v49, %v1599_v14  ;;  %vm203_vm14 = vcmp.eq.s32.totalorder %v71_v50, %v1599_v14  ;;  %v102_v55 = vadd.s32 280, %v1585_v1  ;;  %vm235_vm15 = vcmp.eq.s32.totalorder %v103_v51, %v1599_v14 }
  0x43   :  { %1310 = vmatprep.subr.msk.mxu0 %vm220_vm8, %v1553_v19  ;;  %1351 = vmatprep.subr.msk.mxu1 %vm252_vm9, %v1553_v19  ;;  %vm218_vm0 = vcmp.eq.s32.totalorder %v86_v52, %v1599_v14  ;;  %vm250_vm1 = vcmp.eq.s32.totalorder %v118_v53, %v1599_v14  ;;  %v85_v56 = vadd.s32 144, %v1585_v1  ;;  %vm202_vm2 = vcmp.eq.s32.totalorder %v70_v54, %v1599_v14 }
  0x44   :  { %1311 = vmatpush3.msk.msra.mxu0 %vm204_vm10, %v1553_v19  ;;  %1352 = vmatpush3.msk.msra.mxu1 %vm236_vm11, %v1553_v19  ;;  %v117_v57 = vadd.s32 400, %v1585_v1  ;;  %v69_v58 = vadd.s32 16, %v1585_v1  ;;  %v101_v59 = vadd.s32 272, %v1585_v1  ;;  %vm234_vm3 = vcmp.eq.s32.totalorder %v102_v55, %v1599_v14 }
  0x45   :  { %1312 = vmatprep.subr.msk.mxu0 %vm219_vm12, %v1553_v19  ;;  %1353 = vmatprep.subr.msk.mxu1 %vm251_vm13, %v1553_v19  ;;  %v84_v60 = vadd.s32 136, %v1585_v1  ;;  %v116_v61 = vadd.s32 392, %v1585_v1  ;;  %v68_v62 = vadd.s32 8, %v1585_v1  ;;  %vm217_vm4 = vcmp.eq.s32.totalorder %v85_v56, %v1599_v14 }
  0x46   :  { %1313 = vmatpush3.msk.msra.mxu0 %vm203_vm14, %v1553_v19  ;;  %1354 = vmatpush3.msk.msra.mxu1 %vm235_vm15, %v1553_v19  ;;  %vm249_vm5 = vcmp.eq.s32.totalorder %v117_v57, %v1599_v14  ;;  %v100_v63 = vadd.s32 264, %v1585_v1  ;;  %vm201_vm6 = vcmp.eq.s32.totalorder %v69_v58, %v1599_v14  ;;  %vm233_vm7 = vcmp.eq.s32.totalorder %v101_v59, %v1599_v14  ;;  %v595_v58 = vld [vmem:[#allocation6 + $0x48] sm:$0xff] }
  0x47   :  { %1314 = vmatprep.subr.msk.mxu0 %vm218_vm0, %v1553_v19  ;;  %1355 = vmatprep.subr.msk.mxu1 %vm250_vm1, %v1553_v19  ;;  %vm216_vm8 = vcmp.eq.s32.totalorder %v84_v60, %v1599_v14  ;;  %v83_v3 = vadd.s32 128, %v1585_v1  ;;  %vm248_vm9 = vcmp.eq.s32.totalorder %v116_v61, %v1599_v14  ;;  %vm200_vm10 = vcmp.eq.s32.totalorder %v68_v62, %v1599_v14  ;;  %v619_v61 = vld [vmem:[#allocation8 + $0x48] sm:$0xff]  ;;  %v597_v62 = vld [vmem:[#allocation6 + $0x58] sm:$0xff] }
  0x48   :  { %1315 = vmatpush3.msk.msra.mxu0 %vm202_vm2, %v1553_v19  ;;  %1356 = vmatpush3.msk.msra.mxu1 %vm234_vm3, %v1553_v19  ;;  %vm232_vm11 = vcmp.eq.s32.totalorder %v100_v63, %v1599_v14  ;;  %v115_v6 = vadd.s32 384, %v1585_v1  ;;  %vm199_vm13 = vcmp.eq.s32.totalorder %v1585_v1, %v1599_v14  ;;  %v635_v9 = vsub.f32 %v587_v0, %v611_v2  ;;  %v621_v63 = vld [vmem:[#allocation8 + $0x58] sm:$0xff] }
  0x49   :  { %1316 = vmatprep.subr.msk.mxu0 %vm217_vm4, %v1553_v19  ;;  %1357 = vmatprep.subr.msk.mxu1 %vm249_vm5, %v1553_v19  ;;  %vm215_vm12 = vcmp.eq.s32.totalorder %v83_v3, %v1599_v14  ;;  %v99_v10 = vadd.s32 256, %v1585_v1  ;;  %v637_v13 = vsub.f32 %v589_v4, %v613_v5  ;;  %v162_v15 = vadd.s32 760, %v1585_v1  ;;  %v594_v3 = vld [vmem:[#allocation6 + $0x40] sm:$0xff] }
  0x4a   :  { %1317 = vmatpush3.msk.msra.mxu0 %vm201_vm6, %v1553_v19  ;;  %1358 = vmatpush3.msk.msra.mxu1 %vm233_vm7, %v1553_v19  ;;  %vm247_vm14 = vcmp.eq.s32.totalorder %v115_v6, %v1599_v14  ;;  %v194_v16 = vadd.s32 1016, %v1585_v1  ;;  %v634_v17 = vsub.f32 %v586_v7, %v610_v8  ;;  %v146_v18 = vadd.s32 632, %v1585_v1  ;;  %v618_v4 = vld [vmem:[#allocation8 + $0x40] sm:$0xff]  ;;  %v596_v7 = vld [vmem:[#allocation6 + $0x50] sm:$0xff] }
  0x4b   :  { %1318 = vmatprep.subr.msk.mxu0 %vm216_vm8, %v1553_v19  ;;  %1359 = vmatprep.subr.msk.mxu1 %vm248_vm9, %v1553_v19  ;;  %v178_v20 = vadd.s32 888, %v1585_v1  ;;  %v161_v21 = vadd.s32 752, %v1585_v1  ;;  %vm231_vm15 = vcmp.eq.s32.totalorder %v99_v10, %v1599_v14  ;;  %v636_v22 = vsub.f32 %v588_v11, %v612_v12  ;;  %v620_v8 = vld [vmem:[#allocation8 + $0x50] sm:$0xff] }
  0x4c   :  { %1319 = vmatpush3.msk.msra.mxu0 %vm200_vm10, %v1553_v19  ;;  %1360 = vmatpush3.msk.msra.mxu1 %vm232_vm11, %v1553_v19  ;;  %v193_v23 = vadd.s32 1008, %v1585_v1  ;;  %v145_v24 = vadd.s32 624, %v1585_v1  ;;  %vm294_vm0 = vcmp.eq.s32.totalorder %v162_v15, %v1599_v14  ;;  %v177_v25 = vadd.s32 880, %v1585_v1 }
  0x4d   :  { %1320 = vmatprep.subr.msk.mxu0 %vm215_vm12, %v1553_v19  ;;  %1361 = vmatprep.subr.msk.mxu1 %vm247_vm14, %v1553_v19  ;;  %vm326_vm1 = vcmp.eq.s32.totalorder %v194_v16, %v1599_v14  ;;  %vm278_vm2 = vcmp.eq.s32.totalorder %v146_v18, %v1599_v14  ;;  %v160_v26 = vadd.s32 744, %v1585_v1  ;;  %v192_v27 = vadd.s32 1000, %v1585_v1  ;;  %v603_v16 = vld [vmem:[#allocation6 + $0x88] sm:$0xff] }
  0x4e   :  { %1321 = vmatpush3.msk.msra.mxu0 %vm199_vm13, %v1553_v19  ;;  %722 = vmatprep.mubr.f32.mxu0 %v635_v9  ;;  %vm310_vm3 = vcmp.eq.s32.totalorder %v178_v20, %v1599_v14  ;;  %vm293_vm4 = vcmp.eq.s32.totalorder %v161_v21, %v1599_v14  ;;  %v144_v28 = vadd.s32 616, %v1585_v1  ;;  %v176_v29 = vadd.s32 872, %v1585_v1  ;;  %v605_v21 = vld [vmem:[#allocation6 + $0x98] sm:$0xff] }
  0x4f   :  { %1362 = vmatpush3.msk.msra.mxu1 %vm231_vm15, %v1553_v19  ;;  %802 = vmatprep.mubr.f32.mxu1 %v637_v13  ;;  %vm325_vm5 = vcmp.eq.s32.totalorder %v193_v23, %v1599_v14  ;;  %vm277_vm6 = vcmp.eq.s32.totalorder %v145_v24, %v1599_v14  ;;  %v159_v30 = vadd.s32 736, %v1585_v1  ;;  %v191_v31 = vadd.s32 992, %v1585_v1 }
  0x50   :  { %723 = vmatmul.mubr.f32.vlgmr.msra.gmra.mxu0 %v634_v17  ;;  %803 = vmatmul.mubr.f32.vlgmr.msra.gmra.mxu1 %v636_v22  ;;  %vm309_vm7 = vcmp.eq.s32.totalorder %v177_v25, %v1599_v14  ;;  %vm292_vm8 = vcmp.eq.s32.totalorder %v160_v26, %v1599_v14  ;;  %v143_v32 = vadd.s32 608, %v1585_v1  ;;  %v175_v33 = vadd.s32 864, %v1585_v1  ;;  %v627_v17 = vld [vmem:[#allocation8 + $0x88] sm:$0xff]  ;;  %v629_v22 = vld [vmem:[#allocation8 + $0x98] sm:$0xff]  ;;  %v602_v26 = vld [vmem:[#allocation6 + $0x80] sm:$0xff] }
  0x51   :  { %1372 = vmatprep.subr.msk.mxu0 %vm294_vm0, %v1553_v19  ;;  %1413 = vmatprep.subr.msk.mxu1 %vm326_vm1, %v1553_v19  ;;  %vm324_vm9 = vcmp.eq.s32.totalorder %v192_v27, %v1599_v14  ;;  %vm276_vm10 = vcmp.eq.s32.totalorder %v144_v28, %v1599_v14  ;;  %v158_v34 = vadd.s32 728, %v1585_v1  ;;  %v190_v35 = vadd.s32 984, %v1585_v1  ;;  %v626_v27 = vld [vmem:[#allocation8 + $0x80] sm:$0xff]  ;;  %v604_v28 = vld [vmem:[#allocation6 + $0x90] sm:$0xff] }
  0x52   :  { %1373 = vmatpush3.msk.msra.mxu0 %vm278_vm2, %v1553_v19  ;;  %1414 = vmatpush3.msk.msra.mxu1 %vm310_vm3, %v1553_v19  ;;  %vm308_vm11 = vcmp.eq.s32.totalorder %v176_v29, %v1599_v14  ;;  %v142_v36 = vadd.s32 600, %v1585_v1  ;;  %v174_v37 = vadd.s32 856, %v1585_v1  ;;  %v157_v38 = vadd.s32 720, %v1585_v1  ;;  %v628_v29 = vld [vmem:[#allocation8 + $0x90] sm:$0xff] }
  0x53   :  { %1374 = vmatprep.subr.msk.mxu0 %vm293_vm4, %v1553_v19  ;;  %1415 = vmatprep.subr.msk.mxu1 %vm325_vm5, %v1553_v19  ;;  %vm291_vm12 = vcmp.eq.s32.totalorder %v159_v30, %v1599_v14  ;;  %vm323_vm13 = vcmp.eq.s32.totalorder %v191_v31, %v1599_v14  ;;  %v189_v39 = vadd.s32 976, %v1585_v1  ;;  %v141_v40 = vadd.s32 592, %v1585_v1 }
  0x54   :  { %1375 = vmatpush3.msk.msra.mxu0 %vm277_vm6, %v1553_v19  ;;  %1416 = vmatpush3.msk.msra.mxu1 %vm309_vm7, %v1553_v19  ;;  %vm275_vm14 = vcmp.eq.s32.totalorder %v143_v32, %v1599_v14  ;;  %vm307_vm15 = vcmp.eq.s32.totalorder %v175_v33, %v1599_v14  ;;  %vm290_vm0 = vcmp.eq.s32.totalorder %v158_v34, %v1599_v14  ;;  %v173_v41 = vadd.s32 848, %v1585_v1 }
  0x55   :  { %1376 = vmatprep.subr.msk.mxu0 %vm292_vm8, %v1553_v19  ;;  %1417 = vmatprep.subr.msk.mxu1 %vm324_vm9, %v1553_v19  ;;  %vm322_vm1 = vcmp.eq.s32.totalorder %v190_v35, %v1599_v14  ;;  %vm274_vm2 = vcmp.eq.s32.totalorder %v142_v36, %v1599_v14  ;;  %v156_v42 = vadd.s32 712, %v1585_v1  ;;  %v188_v43 = vadd.s32 968, %v1585_v1 }
  0x56   :  { %1377 = vmatpush3.msk.msra.mxu0 %vm276_vm10, %v1553_v19  ;;  %1418 = vmatpush3.msk.msra.mxu1 %vm308_vm11, %v1553_v19  ;;  %vm306_vm3 = vcmp.eq.s32.totalorder %v174_v37, %v1599_v14  ;;  %vm289_vm4 = vcmp.eq.s32.totalorder %v157_v38, %v1599_v14  ;;  %v140_v44 = vadd.s32 584, %v1585_v1  ;;  %v172_v45 = vadd.s32 840, %v1585_v1 }
  0x57   :  { %1378 = vmatprep.subr.msk.mxu0 %vm291_vm12, %v1553_v19  ;;  %1419 = vmatprep.subr.msk.mxu1 %vm323_vm13, %v1553_v19  ;;  %vm321_vm5 = vcmp.eq.s32.totalorder %v189_v39, %v1599_v14  ;;  %vm273_vm6 = vcmp.eq.s32.totalorder %v141_v40, %v1599_v14  ;;  %v155_v46 = vadd.s32 704, %v1585_v1  ;;  %v187_v47 = vadd.s32 960, %v1585_v1 }
  0x58   :  { %1379 = vmatpush3.msk.msra.mxu0 %vm275_vm14, %v1553_v19  ;;  %1420 = vmatpush3.msk.msra.mxu1 %vm307_vm15, %v1553_v19  ;;  %vm305_vm7 = vcmp.eq.s32.totalorder %v173_v41, %v1599_v14  ;;  %vm288_vm8 = vcmp.eq.s32.totalorder %v156_v42, %v1599_v14  ;;  %v139_v48 = vadd.s32 576, %v1585_v1  ;;  %v171_v49 = vadd.s32 832, %v1585_v1 }
  0x59   :  { %1380 = vmatprep.subr.msk.mxu0 %vm290_vm0, %v1553_v19  ;;  %1421 = vmatprep.subr.msk.mxu1 %vm322_vm1, %v1553_v19  ;;  %vm320_vm9 = vcmp.eq.s32.totalorder %v188_v43, %v1599_v14  ;;  %vm272_vm10 = vcmp.eq.s32.totalorder %v140_v44, %v1599_v14  ;;  %v154_v50 = vadd.s32 696, %v1585_v1  ;;  %v186_v51 = vadd.s32 952, %v1585_v1  ;;  %v591_v44 = vld [vmem:[#allocation6 + $0x28] sm:$0xff] }
  0x5a   :  { %1381 = vmatpush3.msk.msra.mxu0 %vm274_vm2, %v1553_v19  ;;  %1422 = vmatpush3.msk.msra.mxu1 %vm306_vm3, %v1553_v19  ;;  %vm304_vm11 = vcmp.eq.s32.totalorder %v172_v45, %v1599_v14  ;;  %v138_v52 = vadd.s32 568, %v1585_v1  ;;  %v170_v53 = vadd.s32 824, %v1585_v1  ;;  %v153_v54 = vadd.s32 688, %v1585_v1  ;;  %v615_v45 = vld [vmem:[#allocation8 + $0x28] sm:$0xff] }
  0x5b   :  { %1382 = vmatprep.subr.msk.mxu0 %vm289_vm4, %v1553_v19  ;;  %1423 = vmatprep.subr.msk.mxu1 %vm321_vm5, %v1553_v19  ;;  %vm287_vm12 = vcmp.eq.s32.totalorder %v155_v46, %v1599_v14  ;;  %vm319_vm13 = vcmp.eq.s32.totalorder %v187_v47, %v1599_v14  ;;  %v185_v55 = vadd.s32 944, %v1585_v1  ;;  %v137_v56 = vadd.s32 560, %v1585_v1  ;;  %v593_v46 = vld [vmem:[#allocation6 + $0x38] sm:$0xff] }
  0x5c   :  { %1383 = vmatpush3.msk.msra.mxu0 %vm273_vm6, %v1553_v19  ;;  %1424 = vmatpush3.msk.msra.mxu1 %vm305_vm7, %v1553_v19  ;;  %vm271_vm14 = vcmp.eq.s32.totalorder %v139_v48, %v1599_v14  ;;  %vm303_vm15 = vcmp.eq.s32.totalorder %v171_v49, %v1599_v14  ;;  %v169_v57 = vadd.s32 816, %v1585_v1  ;;  %vm286_vm0 = vcmp.eq.s32.totalorder %v154_v50, %v1599_v14  ;;  %v617_v48 = vld [vmem:[#allocation8 + $0x38] sm:$0xff]  ;;  %v590_v49 = vld [vmem:[#allocation6 + $0x20] sm:$0xff] }
  0x5d   :  { %1384 = vmatprep.subr.msk.mxu0 %vm288_vm8, %v1553_v19  ;;  %1425 = vmatprep.subr.msk.mxu1 %vm320_vm9, %v1553_v19  ;;  %vm318_vm1 = vcmp.eq.s32.totalorder %v186_v51, %v1599_v14  ;;  %v152_v59 = vadd.s32 680, %v1585_v1  ;;  %v184_v60 = vadd.s32 936, %v1585_v1  ;;  %vm270_vm2 = vcmp.eq.s32.totalorder %v138_v52, %v1599_v14  ;;  %v614_v50 = vld [vmem:[#allocation8 + $0x20] sm:$0xff]  ;;  %v592_v51 = vld [vmem:[#allocation6 + $0x30] sm:$0xff] }
  0x5e   :  { %1385 = vmatpush3.msk.msra.mxu0 %vm272_vm10, %v1553_v19  ;;  %1426 = vmatpush3.msk.msra.mxu1 %vm304_vm11, %v1553_v19  ;;  %vm302_vm3 = vcmp.eq.s32.totalorder %v170_v53, %v1599_v14  ;;  %vm285_vm4 = vcmp.eq.s32.totalorder %v153_v54, %v1599_v14  ;;  %vm317_vm5 = vcmp.eq.s32.totalorder %v185_v55, %v1599_v14  ;;  %v136_v0 = vadd.s32 552, %v1585_v1  ;;  %v616_v52 = vld [vmem:[#allocation8 + $0x30] sm:$0xff]  ;;  %v599_v53 = vld [vmem:[#allocation6 + $0x68] sm:$0xff]  ;;  %v601_v55 = vld [vmem:[#allocation6 + $0x78] sm:$0xff] }
  0x5f   :  { %1386 = vmatprep.subr.msk.mxu0 %vm287_vm12, %v1553_v19  ;;  %1427 = vmatprep.subr.msk.mxu1 %vm319_vm13, %v1553_v19  ;;  %vm269_vm6 = vcmp.eq.s32.totalorder %v137_v56, %v1599_v14  ;;  %v168_v2 = vadd.s32 808, %v1585_v1  ;;  %vm301_vm7 = vcmp.eq.s32.totalorder %v169_v57, %v1599_v14  ;;  %v643_v5 = vsub.f32 %v595_v58, %v619_v61  ;;  %v623_v54 = vld [vmem:[#allocation8 + $0x68] sm:$0xff]  ;;  %v625_v56 = vld [vmem:[#allocation8 + $0x78] sm:$0xff]  ;;  %v622_v61 = vld [vmem:[#allocation8 + $0x60] sm:$0xff] }
  0x60   :  { %1387 = vmatpush3.msk.msra.mxu0 %vm271_vm14, %v1553_v19  ;;  %1428 = vmatpush3.msk.msra.mxu1 %vm303_vm15, %v1553_v19  ;;  %v645_v6 = vsub.f32 %v597_v62, %v621_v63  ;;  %vm284_vm8 = vcmp.eq.s32.totalorder %v152_v59, %v1599_v14  ;;  %vm316_vm9 = vcmp.eq.s32.totalorder %v184_v60, %v1599_v14  ;;  %v151_v9 = vadd.s32 672, %v1585_v1  ;;  %v598_v60 = vld [vmem:[#allocation6 + $0x60] sm:$0xff] }
  0x61   :  { %1388 = vmatprep.subr.msk.mxu0 %vm286_vm0, %v1553_v19  ;;  %1429 = vmatprep.subr.msk.mxu1 %vm318_vm1, %v1553_v19  ;;  %v183_v10 = vadd.s32 928, %v1585_v1  ;;  %v642_v11 = vsub.f32 %v594_v3, %v618_v4  ;;  %v135_v12 = vadd.s32 544, %v1585_v1  ;;  %v167_v13 = vadd.s32 800, %v1585_v1  ;;  %v607_v3 = vld [vmem:[#allocation6 + $0xa8] sm:$0xff] }
  0x62   :  { %1389 = vmatpush3.msk.msra.mxu0 %vm270_vm2, %v1553_v19  ;;  %1430 = vmatpush3.msk.msra.mxu1 %vm302_vm3, %v1553_v19  ;;  %v150_v15 = vadd.s32 664, %v1585_v1  ;;  %vm268_vm10 = vcmp.eq.s32.totalorder %v136_v0, %v1599_v14  ;;  %vm300_vm11 = vcmp.eq.s32.totalorder %v168_v2, %v1599_v14  ;;  %v644_v18 = vsub.f32 %v596_v7, %v620_v8  ;;  %v600_v0 = vld [vmem:[#allocation6 + $0x70] sm:$0xff]  ;;  %v631_v4 = vld [vmem:[#allocation8 + $0xa8] sm:$0xff] }
  0x63   :  { %1390 = vmatprep.subr.msk.mxu0 %vm285_vm4, %v1553_v19  ;;  %1431 = vmatprep.subr.msk.mxu1 %vm317_vm5, %v1553_v19  ;;  %v182_v20 = vadd.s32 920, %v1585_v1  ;;  %v134_v23 = vadd.s32 536, %v1585_v1  ;;  %vm283_vm12 = vcmp.eq.s32.totalorder %v151_v9, %v1599_v14  ;;  %vm315_vm13 = vcmp.eq.s32.totalorder %v183_v10, %v1599_v14  ;;  %v624_v2 = vld [vmem:[#allocation8 + $0x70] sm:$0xff]  ;;  %v606_v9 = vld [vmem:[#allocation6 + $0xa0] sm:$0xff] }
  0x64   :  { %1391 = vmatpush3.msk.msra.mxu0 %vm269_vm6, %v1553_v19  ;;  %1432 = vmatpush3.msk.msra.mxu1 %vm301_vm7, %v1553_v19  ;;  %v651_v24 = vsub.f32 %v603_v16, %v627_v17  ;;  %v166_v25 = vadd.s32 792, %v1585_v1  ;;  %vm267_vm14 = vcmp.eq.s32.totalorder %v135_v12, %v1599_v14  ;;  %vm299_vm15 = vcmp.eq.s32.totalorder %v167_v13, %v1599_v14  ;;  %v630_v12 = vld [vmem:[#allocation8 + $0xa0] sm:$0xff]  ;;  %v608_v13 = vld [vmem:[#allocation6 + $0xb0] sm:$0xff] }
  0x65   :  { %1392 = vmatprep.subr.msk.mxu0 %vm284_vm8, %v1553_v19  ;;  %1433 = vmatprep.subr.msk.mxu1 %vm316_vm9, %v1553_v19  ;;  %vm282_vm0 = vcmp.eq.s32.totalorder %v150_v15, %v1599_v14  ;;  %vm314_vm1 = vcmp.eq.s32.totalorder %v182_v20, %v1599_v14  ;;  %v653_v30 = vsub.f32 %v605_v21, %v629_v22  ;;  %v149_v31 = vadd.s32 656, %v1585_v1  ;;  %v632_v15 = vld [vmem:[#allocation8 + $0xb0] sm:$0xff] }
  0x66   :  { %727 = vmatprep.mubr.f32.mxu0 %v643_v5  ;;  %807 = vmatprep.mubr.f32.mxu1 %v645_v6  ;;  %v181_v32 = vadd.s32 912, %v1585_v1  ;;  %vm266_vm2 = vcmp.eq.s32.totalorder %v134_v23, %v1599_v14  ;;  %v650_v33 = vsub.f32 %v602_v26, %v626_v27  ;;  %v133_v34 = vadd.s32 528, %v1585_v1  ;;  %v609_v5 = vld [vmem:[#allocation6 + $0xb8] sm:$0xff] }
  0x67   :  { %1393 = vmatpush3.msk.msra.mxu0 %vm268_vm10, %v1553_v19  ;;  %1434 = vmatpush3.msk.msra.mxu1 %vm300_vm11, %v1553_v19  ;;  %v165_v35 = vadd.s32 784, %v1585_v1  ;;  %vm298_vm3 = vcmp.eq.s32.totalorder %v166_v25, %v1599_v14  ;;  %v652_v36 = vsub.f32 %v604_v28, %v628_v29  ;;  %v148_v37 = vadd.s32 648, %v1585_v1  ;;  %v633_v6 = vld [vmem:[#allocation8 + $0xb8] sm:$0xff] }
  0x68   :  { %728 = vmatmul.mubr.f32.gmra.mxu0 %v642_v11  ;;  %808 = vmatmul.mubr.f32.gmra.mxu1 %v644_v18  ;;  %v180_v38 = vadd.s32 904, %v1585_v1  ;;  %v132_v39 = vadd.s32 520, %v1585_v1  ;;  %v164_v40 = vadd.s32 776, %v1585_v1  ;;  %vm281_vm4 = vcmp.eq.s32.totalorder %v149_v31, %v1599_v14 }
  0x69   :  { %1394 = vmatprep.subr.msk.mxu0 %vm283_vm12, %v1553_v19  ;;  %1435 = vmatprep.subr.msk.mxu1 %vm315_vm13, %v1553_v19  ;;  %vm313_vm5 = vcmp.eq.s32.totalorder %v181_v32, %v1599_v14  ;;  %v147_v41 = vadd.s32 640, %v1585_v1  ;;  %v179_v42 = vadd.s32 896, %v1585_v1  ;;  %vm265_vm6 = vcmp.eq.s32.totalorder %v133_v34, %v1599_v14 }
  0x6a   :  { %1395 = vmatpush3.msk.msra.mxu0 %vm267_vm14, %v1553_v19  ;;  %1436 = vmatpush3.msk.msra.mxu1 %vm299_vm15, %v1553_v19  ;;  %vm297_vm7 = vcmp.eq.s32.totalorder %v165_v35, %v1599_v14  ;;  %v131_v43 = vadd.s32 512, %v1585_v1  ;;  %vm280_vm8 = vcmp.eq.s32.totalorder %v148_v37, %v1599_v14  ;;  %vm312_vm9 = vcmp.eq.s32.totalorder %v180_v38, %v1599_v14 }
  0x6b   :  { %1396 = vmatprep.subr.msk.mxu0 %vm282_vm0, %v1553_v19  ;;  %1437 = vmatprep.subr.msk.mxu1 %vm314_vm1, %v1553_v19  ;;  %v163_v47 = vadd.s32 768, %v1585_v1  ;;  %vm264_vm10 = vcmp.eq.s32.totalorder %v132_v39, %v1599_v14  ;;  %vm296_vm11 = vcmp.eq.s32.totalorder %v164_v40, %v1599_v14  ;;  %vm279_vm12 = vcmp.eq.s32.totalorder %v147_v41, %v1599_v14 }
  0x6c   :  { %732 = vmatprep.mubr.f32.mxu0 %v651_v24  ;;  %812 = vmatprep.mubr.f32.mxu1 %v653_v30  ;;  %vm311_vm13 = vcmp.eq.s32.totalorder %v179_v42, %v1599_v14  ;;  %v639_v1 = vsub.f32 %v591_v44, %v615_v45  ;;  %vm263_vm14 = vcmp.eq.s32.totalorder %v131_v43, %v1599_v14  ;;  %vm58_vm0 = vcmask 244736  }
  0x6d   :  { %1397 = vmatpush3.msk.msra.mxu0 %vm266_vm2, %v1553_v19  ;;  %1438 = vmatpush3.msk.msra.mxu1 %vm298_vm3, %v1553_v19  ;;  %v641_v57 = vsub.f32 %v593_v46, %v617_v48  ;;  %vm295_vm15 = vcmp.eq.s32.totalorder %v163_v47, %v1599_v14  ;;  %v638_v58 = vsub.f32 %v590_v49, %v614_v50  ;;  %v1554_v14 = vmov 0.0  }
  0x6e   :  { %733 = vmatmul.mubr.f32.gmra.mxu0 %v650_v33  ;;  %813 = vmatmul.mubr.f32.gmra.mxu1 %v652_v36  ;;  %v640_v59 = vsub.f32 %v592_v51, %v616_v52  ;;  %v647_v62 = vsub.f32 %v599_v53, %v623_v54  ;;  %v649_v63 = vsub.f32 %v601_v55, %v625_v56  ;;  %vm1015_vm1 = vcmask 0  }
  0x6f   :  { %1398 = vmatprep.subr.msk.mxu0 %vm281_vm4, %v1553_v19  ;;  %1439 = vmatprep.subr.msk.mxu1 %vm313_vm5, %v1553_v19  ;;  %v646_v7 = vsub.f32 %v598_v60, %v622_v61  ;;  %v648_v8 = vsub.f32 %v600_v0, %v624_v2  ;;  %v655_v10 = vsub.f32 %v607_v3, %v631_v4 }
  0x70   :  { %1399 = vmatpush3.msk.msra.mxu0 %vm265_vm6, %v1553_v19  ;;  %1440 = vmatpush3.msk.msra.mxu1 %vm297_vm7, %v1553_v19  ;;  %v657_v11 = vsub.f32 %v609_v5, %v633_v6  ;;  %v654_v16 = vsub.f32 %v606_v9, %v630_v12  ;;  %v656_v17 = vsub.f32 %v608_v13, %v632_v15 }
  0x71   :  { %1400 = vmatprep.subr.msk.mxu0 %vm280_vm8, %v1553_v19  ;;  %1441 = vmatprep.subr.msk.mxu1 %vm312_vm9, %v1553_v19  ;;  %59 = vst.msk [vmem:[#allocation2] sm:$0xff] %vm58_vm0, %v1554_v14  ;;  %60 = vst.msk [vmem:[#allocation2 + $0x8] sm:$0xff] %vm58_vm0, %v1554_v14 }
  0x72   :  { %1401 = vmatpush3.msk.msra.mxu0 %vm264_vm10, %v1553_v19  ;;  %1442 = vmatpush3.msk.msra.mxu1 %vm296_vm11, %v1553_v19  ;;  %61 = vst.msk [vmem:[#allocation2 + $0x10] sm:$0xff] %vm58_vm0, %v1554_v14 }
  0x73   :  { %1402 = vmatprep.subr.msk.mxu0 %vm279_vm12, %v1553_v19  ;;  %1443 = vmatprep.subr.msk.mxu1 %vm311_vm13, %v1553_v19 }
  0x74   :  { %1403 = vmatpush3.msk.msra.mxu0 %vm263_vm14, %v1553_v19  ;;  %882 = vmatprep.mubr.f32.mxu0 %v639_v1 }
  0x75   :  { %1444 = vmatpush3.msk.msra.mxu1 %vm295_vm15, %v1553_v19  ;;  %962 = vmatprep.mubr.f32.mxu1 %v641_v57 }
  0x76   :  { %883 = vmatmul.mubr.f32.vlgmr.msra.gmra.mxu0 %v638_v58  ;;  %963 = vmatmul.mubr.f32.vlgmr.msra.gmra.mxu1 %v640_v59 }
  0x77   :  { %887 = vmatprep.mubr.f32.mxu0 %v647_v62  ;;  %967 = vmatprep.mubr.f32.mxu1 %v649_v63 }
  0x78   :  { %v583_v45 = vld [vmem:[#allocation2] sm:$0xff]  ;;  %v584_v56 = vld [vmem:[#allocation2 + $0x8] sm:$0xff] }
  0x79   :  { %v585_v2 = vld [vmem:[#allocation2 + $0x10] sm:$0xff] }
  0x7a   :  { %888 = vmatmul.mubr.f32.gmra.mxu0 %v646_v7  ;;  %968 = vmatmul.mubr.f32.gmra.mxu1 %v648_v8 }
  0x7b   :  { %892 = vmatprep.mubr.f32.mxu0 %v655_v10  ;;  %972 = vmatprep.mubr.f32.mxu1 %v657_v11 }
  0x7e   :  { %893 = vmatmul.mubr.f32.gmra.mxu0 %v654_v16  ;;  %973 = vmatmul.mubr.f32.gmra.mxu1 %v656_v17 }
 0x110   :  { %v1322_v19 = vpop.f32.mrf.mxu0  ;;  %v1363_v18 = vpop.f32.mrf.mxu1 }
 0x112   :  { %v1323_v20 = vpop.f32.mrf.mxu0  ;;  %v1364_v21 = vpop.f32.mrf.mxu1 }
 0x113   :  { %v1324_v30 = vadd.f32 %v1323_v20, %v1322_v19  ;;  %v1365_v31 = vadd.f32 %v1364_v21, %v1363_v18 }
 0x115   :  { %v805_v38 = vadd.f32 %v1365_v31, %v1324_v30 }
 0x128   :  { %v1325_v22 = vpop.f32.mrf.mxu0  ;;  %v1366_v23 = vpop.f32.mrf.mxu1 }
 0x12a   :  { %v1326_v24 = vpop.f32.mrf.mxu0  ;;  %v1367_v25 = vpop.f32.mrf.mxu1 }
 0x12b   :  { %v1327_v34 = vadd.f32 %v1326_v24, %v1325_v22  ;;  %v1368_v35 = vadd.f32 %v1367_v25, %v1366_v23 }
 0x12d   :  { %v810_v44 = vadd.f32 %v1368_v35, %v1327_v34 }
 0x12e   :  { %v1328_v26 = vpop.f32.mrf.mxu0  ;;  %v1369_v27 = vpop.f32.mrf.mxu1 }
 0x130   :  { %v1329_v28 = vpop.f32.mrf.mxu0  ;;  %v1370_v29 = vpop.f32.mrf.mxu1 }
 0x131   :  { %v1330_v48 = vadd.f32 %v1329_v28, %v1328_v26  ;;  %v1371_v49 = vadd.f32 %v1370_v29, %v1369_v27 }
 0x133   :  { %v815_v59 = vadd.f32 %v1371_v49, %v1330_v48 }
 0x136   :  { %v1404_v32 = vpop.f32.mrf.mxu0  ;;  %v1445_v33 = vpop.f32.mrf.mxu1 }
 0x138   :  { %v1405_v36 = vpop.f32.mrf.mxu0  ;;  %v1446_v37 = vpop.f32.mrf.mxu1 }
 0x139   :  { %v1406_v39 = vadd.f32 %v1405_v36, %v1404_v32  ;;  %v1447_v43 = vadd.f32 %v1446_v37, %v1445_v33 }
 0x13a   :  { %v1407_v40 = vpop.f32.mrf.mxu0  ;;  %v1448_v41 = vpop.f32.mrf.mxu1 }
 0x13b   :  { %v885_v42 = vadd.f32 %v1406_v39, %v805_v38 }
 0x13c   :  { %v1408_v46 = vpop.f32.mrf.mxu0  ;;  %v1449_v47 = vpop.f32.mrf.mxu1 }
 0x13d   :  { %v965_v50 = vadd.f32 %v1447_v43, %v885_v42  ;;  %v1409_v51 = vadd.f32 %v1408_v46, %v1407_v40  ;;  %v1450_v55 = vadd.f32 %v1449_v47, %v1448_v41 }
 0x13e   :  { %v1410_v52 = vpop.f32.mrf.mxu0  ;;  %v1451_v53 = vpop.f32.mrf.mxu1 }
 0x13f   :  { %v978_v1 = vadd.f32 %v965_v50, %v583_v45  ;;  %v890_v54 = vadd.f32 %v1409_v51, %v810_v44 }
 0x140   :  { %v1411_v57 = vpop.f32.mrf.mxu0  ;;  %v1452_v58 = vpop.f32.mrf.mxu1 }
 0x141   :  { %982 = vst.msk [vmem:[#allocation2] sm:$0xff] %vm58_vm0, %v978_v1  ;;  %v970_v60 = vadd.f32 %v1450_v55, %v890_v54  ;;  %v1412_v61 = vadd.f32 %v1411_v57, %v1410_v52  ;;  %v1453_v0 = vadd.f32 %v1452_v58, %v1451_v53 }
 0x143   :  { %v979_v62 = vadd.f32 %v970_v60, %v584_v56  ;;  %v895_v63 = vadd.f32 %v1412_v61, %v815_v59 }
 0x145   :  { %983 = vst.msk [vmem:[#allocation2 + $0x8] sm:$0xff] %vm58_vm0, %v979_v62  ;;  %v975_v3 = vadd.f32 %v1453_v0, %v895_v63 }
 0x147   :  { %v980_v4 = vadd.f32 %v975_v3, %v585_v2 }
 0x148   :  { %v988_v5 = vld [vmem:[#allocation2] sm:$0xff] }
 0x149   :  { %984 = vst.msk [vmem:[#allocation2 + $0x10] sm:$0xff] %vm58_vm0, %v980_v4  ;;  %v991_v6 = vadd.f32 1e-06, %v988_v5 }
 0x14b   :  { %v994_v7 = vmul.f32 %v991_v6, %v991_v6 }
 0x14c   :  { %v989_v8 = vld [vmem:[#allocation2 + $0x8] sm:$0xff] }
 0x14d   :  { %v997_v9 = vsel %vm58_vm0, %v994_v7, 0.0  ;;  %v992_v10 = vadd.f32 1e-06, %v989_v8 }
 0x14e   :  { %998 = vadd.xlane.f32.xlu0 %v997_v9 }
 0x14f   :  { %v995_v11 = vmul.f32 %v992_v10, %v992_v10 }
 0x150   :  { %v990_v12 = vld [vmem:[#allocation2 + $0x10] sm:$0xff] }
 0x151   :  { %v1000_v13 = vsel %vm58_vm0, %v995_v11, 0.0  ;;  %v993_v15 = vadd.f32 1e-06, %v990_v12 }
 0x152   :  { %1001 = vadd.xlane.f32.xlu0 %v1000_v13 }
 0x153   :  { %v996_v16 = vmul.f32 %v993_v15, %v993_v15 }
 0x155   :  { %v1003_v17 = vsel %vm58_vm0, %v996_v16, 0.0 }
 0x156   :  { %1004 = vadd.xlane.f32.xlu1 %v1003_v17 }
 0x1d7   :  { %v999_v14 = vpop.xlane.xlu0 %998 }
 0x1db   :  { %v1002_v19 = vpop.xlane.xlu0 %1001 }
 0x1dc   :  { %v1006_v18 = vadd.f32 %v1002_v19, %v999_v14 }
 0x1df   :  { %v1005_v20 = vpop.xlane.xlu1 %1004 }
 0x1e0   :  { %v1007_v21 = vadd.f32 %v1006_v18, %v1005_v20 }
 0x1e2   :  { %v1008_v22 = vrot.slane %v1007_v21, 4 }
 0x1e4   :  { %v1009_v23 = vadd.f32 %v1008_v22, %v1007_v21 }
 0x1e6   :  { %v1010_v24 = vrot.slane %v1009_v23, 2 }
 0x1e8   :  { %v1011_v25 = vadd.f32 %v1010_v24, %v1009_v23 }
 0x1ea   :  { %v1012_v26 = vrot.slane %v1011_v25, 1 }
 0x1ec   :  { %v1013_v27 = vadd.f32 %v1012_v26, %v1011_v25 }
 0x1ee   :  { %v1014_v28 = vmul.f32 0.125, %v1013_v27 }
 0x1f0   :  { %1016 = vst.msk [vmem:[#allocation9] sm:$0x1] %vm1015_vm1, %v1014_v28 }
 0x1f1   :  { %1533 = shalt.err (!%p1530_p5)
}
 0x1f2   :  { %1026 = dma.vmem_to_hbm [thread:$0]  %s1024_s2, 16, %s2217_s3, [#allocation5]  }
 0x1f3   :  { %1546 = dma.done.wait [#allocation5], 16  }
 0x1f4   :  { %1547 = vsyncadd [#allocation5], 4294967280 }
 0x1f5   :  { %1030 = vsyncpa [#allocation4], 1 }
 0x1f6   :  { %1031 = vsyncpa [#allocation7], 1 }
 0x1f7   :  { %1032 = vsyncpa [#allocation5], 1 }

</bundles_post_ra>
